<compile_context>
chip_gen: v5e
topology: v5e:2x2
jax: 0.10.0
libtpu: 0.0.40
codegen_flags: <defaults>
</compile_context>

<pallas_src>
import jax
import jax.numpy as jnp
from jax.experimental import pallas as pl
from jax.experimental.pallas import tpu as pltpu


NORM_TEMPERATURE = 50.0
NORM_WEIGHT = True
USE_BIAS = False      # cfg default use_bias=0.0 -> (0.0 < 0) == False
CLS_BIAS = 0.0        # scalar bias, only applied when USE_BIAS is True
_EPS = 1e-12          # F.normalize default eps

_TB_MAX = 512         # max rows per B tile (stop re-streaming zs per 128 rows)
_TC_MAX = 2048        # max classifier columns per tile (lane-dense output)


def _round_up(x, m):
    return (x + m - 1) // m * m


def _cdiv(a, b):
    return -(-a // b)


def _b_tiling(B):
    """Row tiling. nb == 1 for B <= 512 so zs_weight streams exactly once."""
    if B <= _TB_MAX:
        tb = _round_up(max(B, 1), 16)
        return tb, tb, 1
    nb = _cdiv(B, _TB_MAX)
    tb = _round_up(_cdiv(B, nb), 16)
    return tb, tb * nb, nb


def _c_tiling(Cp1):
    """Column tiling. Prefer 256-aligned lanes (v6e/v7x MXU) unless that adds
    more than ~12.5% extra padded zs columns over 128 alignment."""
    pad128 = _round_up(max(Cp1, 1), 128)
    pad256 = _round_up(max(Cp1, 1), 256)
    base = pad256 if pad256 * 8 <= pad128 * 9 else pad128
    if base <= _TC_MAX:
        return base, base, 1
    nc = _cdiv(base, _TC_MAX)
    tc = _round_up(_cdiv(base, nc), 128)
    return tc, tc * nc, nc


def _vmem_limit(working_set_bytes):
    # Headroom over the double-buffered working set, well under v7x's 64 MiB.
    return int(min(56 << 20, max(working_set_bytes + (4 << 20), 20 << 20)))


# --------------------------------------------------------------------------
# Kernels
# --------------------------------------------------------------------------
def _hidden_kernel(x_ref, w_ref, b_ref, h_ref):
    """h = temp * normalize(x @ W + b); one B tile per grid step."""
    # (TB, D_in) @ (D_in, D): bf16 operands, f32 MXU accumulation.
    h = jnp.dot(x_ref[...].astype(jnp.bfloat16), w_ref[...],
                preferred_element_type=jnp.float32)
    h = h + b_ref[...]
    if NORM_WEIGHT:
        sumsq = jnp.sum(h * h, axis=-1, keepdims=True)
        # fused rsqrt on the EUP; temperature folded into the same multiply.
        inv = jax.lax.rsqrt(jnp.maximum(sumsq, _EPS * _EPS))
        h = h * (NORM_TEMPERATURE * inv)
    h_ref[...] = h            # keep f32; bf16 cast happens at the second dot


def _logits_kernel(h_ref, zs_ref, o_ref):
    """logits tile = h tile @ zs tile; pure streaming of zs_weight."""
    o_ref[...] = jnp.dot(h_ref[...].astype(jnp.bfloat16), zs_ref[...],
                         preferred_element_type=jnp.float32)


# --------------------------------------------------------------------------
# Parameter prep (hoisted, one-time) and forward
# --------------------------------------------------------------------------
def prepare_params(w_lin, b_lin, zs_weight):
    """One-time parameter prep: bf16 cast of the linear weight and lane-padded
    bf16 cast of zs_weight are done ONCE here (stored params), not per call."""
    D_in, D = w_lin.shape
    Dz, Cp1 = zs_weight.shape
    assert Dz == D, (Dz, D)
    _, cp1_pad, _ = _c_tiling(Cp1)
    zs_p = jnp.zeros((D, cp1_pad), jnp.float32).at[:, :Cp1].set(zs_weight)
    return {
        "w_lin": w_lin.astype(jnp.bfloat16),            # (D_in, D)
        "b_lin": b_lin.reshape(1, D).astype(jnp.float32),
        "zs_weight": zs_p.astype(jnp.bfloat16),          # (D, Cp1_pad)
        "num_cols": Cp1,
    }


def zero_shot_classifier_forward(x, params):
    """x: (B, D_in) f32; params from prepare_params. Returns (B, C+1) f32."""
    B, D_in = x.shape
    w_lin, b_lin = params["w_lin"], params["b_lin"]
    zs_p, Cp1 = params["zs_weight"], params["num_cols"]
    D = w_lin.shape[1]

    TB, B_pad, nb = _b_tiling(B)
    TC, Cp1_pad, nc = _c_tiling(Cp1)
    assert zs_p.shape == (D, Cp1_pad), (zs_p.shape, Cp1_pad)

    # Pad activations only (cheap, per-call); params are already padded/cast.
    x_p = x.astype(jnp.float32)
    if B_pad != B:
        x_p = jnp.zeros((B_pad, D_in), jnp.float32).at[:B].set(x_p)

    # ---- stage 1: h = temp * normalize(x @ W + b) ---------------------------
    hidden_ws = 2 * (TB * D_in * 4 + D_in * D * 2 + D * 4 + TB * D * 4)
    hidden_cost = pl.CostEstimate(
        flops=2 * B_pad * D_in * D,
        transcendentals=B_pad,
        bytes_accessed=(B_pad * D_in * 4 + D_in * D * 2 + D * 4
                        + B_pad * D * 4))
    h = pl.pallas_call(
        _hidden_kernel,
        out_shape=jax.ShapeDtypeStruct((B_pad, D), jnp.float32),
        grid_spec=pltpu.PrefetchScalarGridSpec(
            num_scalar_prefetch=0,
            grid=(nb,),
            in_specs=[
                pl.BlockSpec((TB, D_in), lambda i: (i, 0)),   # x tile
                pl.BlockSpec((D_in, D), lambda i: (0, 0)),    # linear weight
                pl.BlockSpec((1, D), lambda i: (0, 0)),       # linear bias
            ],
            out_specs=pl.BlockSpec((TB, D), lambda i: (i, 0)),
        ),
        compiler_params=pltpu.CompilerParams(
            dimension_semantics=("parallel",),
            vmem_limit_bytes=_vmem_limit(hidden_ws)),
        cost_estimate=hidden_cost,
    )(x_p, w_lin, b_lin)

    # ---- stage 2: logits = h @ zs (both grid axes parallel -> megacore) -----
    logits_ws = 2 * (TB * D * 4 + D * TC * 2 + TB * TC * 4)
    logits_cost = pl.CostEstimate(
        flops=2 * B_pad * D * Cp1_pad,
        transcendentals=0,
        bytes_accessed=(B_pad * D * 4               # h read once
                        + nb * D * Cp1_pad * 2      # zs re-streamed per B tile
                        + B_pad * Cp1_pad * 4))     # output
    out = pl.pallas_call(
        _logits_kernel,
        out_shape=jax.ShapeDtypeStruct((B_pad, Cp1_pad), jnp.float32),
        grid_spec=pltpu.PrefetchScalarGridSpec(
            num_scalar_prefetch=0,
            grid=(nb, nc),
            in_specs=[
                pl.BlockSpec((TB, D), lambda i, j: (i, 0)),   # h tile
                pl.BlockSpec((D, TC), lambda i, j: (0, j)),   # zs tile
            ],
            out_specs=pl.BlockSpec((TB, TC), lambda i, j: (i, j)),
        ),
        compiler_params=pltpu.CompilerParams(
            dimension_semantics=("parallel", "parallel"),
            vmem_limit_bytes=_vmem_limit(logits_ws)),
        cost_estimate=logits_cost,
    )(h, zs_p)

    out = out[:B, :Cp1]          # strip row/column padding
    if USE_BIAS:
        out = out + jnp.float32(CLS_BIAS)
    # TODO(synk): the `classifier=` argument path (external classifier,
    # column-normalized on the fly) is not implemented; stored zs_weight only.
    return out


# --------------------------------------------------------------------------
# Synthetic params + pure-JAX reference
# --------------------------------------------------------------------------
def make_params(key, input_size, zs_weight_dim, num_classes):
    """Deterministic synthetic parameters, matching the module's __init__."""
    k1, k2, k3 = jax.random.split(key, 3)
    # nn.Linear(input_size, zs_weight_dim): weight (D, D_in), bias (D).
    # Stored pre-transposed as (D_in, D) for the kernel.
    bound = 1.0 / jnp.sqrt(input_size)
    w_lin = jax.random.uniform(
        k1, (input_size, zs_weight_dim), jnp.float32, -bound, bound)
    b_lin = jax.random.uniform(k2, (zs_weight_dim,), jnp.float32, -bound, bound)

    # zs_weight_path == 'rand': randn (D, C) std=0.01, cat zero column,
    # then L2-normalize each column (dim=0).
    zs = 0.01 * jax.random.normal(k3, (zs_weight_dim, num_classes), jnp.float32)
    zs = jnp.concatenate(
        [zs, jnp.zeros((zs_weight_dim, 1), jnp.float32)], axis=1)
    if NORM_WEIGHT:
        col_norm = jnp.sqrt(jnp.sum(zs * zs, axis=0, keepdims=True))
        zs = zs / jnp.maximum(col_norm, _EPS)
    return w_lin, b_lin, zs


def _reference(x, w_lin, b_lin, zs_weight, *, emulate_bf16):
    hi = jax.lax.Precision.HIGHEST
    f32 = jnp.float32
    if emulate_bf16:
        x = x.astype(jnp.bfloat16).astype(f32)
        w_lin = w_lin.astype(jnp.bfloat16).astype(f32)
        zs_weight = zs_weight.astype(jnp.bfloat16).astype(f32)
    h = jnp.dot(x, w_lin, precision=hi) + b_lin
    if NORM_WEIGHT:
        if emulate_bf16:
            sumsq = jnp.sum(h * h, axis=-1, keepdims=True)
            h = h * (NORM_TEMPERATURE * jax.lax.rsqrt(
                jnp.maximum(sumsq, _EPS * _EPS)))
        else:
            n = jnp.sqrt(jnp.sum(h * h, axis=-1, keepdims=True))
            h = NORM_TEMPERATURE * h / jnp.maximum(n, _EPS)
    if emulate_bf16:
        h = h.astype(jnp.bfloat16).astype(f32)   # dot operand is bf16 in-kernel
    return jnp.dot(h, zs_weight, precision=hi)


# --------------------------------------------------------------------------
# Test
# --------------------------------------------------------------------------
if __name__ == "__main__":

    def run_case(key, B, D_in, zs_dim, num_classes):
        kx, kp = jax.random.split(key)
        x = jax.random.normal(kx, (B, D_in), jnp.float32)
        w_lin, b_lin, zs_weight = make_params(kp, D_in, zs_dim, num_classes)
        params = prepare_params(w_lin, b_lin, zs_weight)   # hoisted, one-time

        out = jax.block_until_ready(zero_shot_classifier_forward(x, params))
        assert out.shape == (B, num_classes + 1), out.shape

        # Tight check: same math at the precision the kernel runs
        # (bf16 MXU operands, f32 accumulation, f32 norm math).
        ref_bf16 = _reference(x, w_lin, b_lin, zs_weight, emulate_bf16=True)
        assert jnp.allclose(out, ref_bf16, atol=3e-2, rtol=3e-2), \
            float(jnp.max(jnp.abs(out - ref_bf16)))

        # Loose check against the full-f32 reference (bf16 operands introduce
        # ~1e-2-level error on logits of magnitude ~norm_temperature/sqrt(D)).
        ref_f32 = _reference(x, w_lin, b_lin, zs_weight, emulate_bf16=False)
        assert jnp.allclose(out, ref_f32, atol=0.35, rtol=0.05), \
            float(jnp.max(jnp.abs(out - ref_f32)))

    key = jax.random.PRNGKey(0)
    k1, k2 = jax.random.split(key)

    # Small-batch case: nb == nc == 1, exercises row padding (20 -> 32) and
    # lane padding (301 -> 384, 128-aligned since 256 would add 33% HBM waste).
    run_case(k1, B=20, D_in=256, zs_dim=256, num_classes=300)

    # Multi-tile case: B > 512 and C+1 > 2048 -> nb = 2, nc = 2; exercises both
    # grid axes of the ("parallel", "parallel") logits kernel.
    run_case(k2, B=520, D_in=128, zs_dim=128, num_classes=2300)

    print("KERNEL_OK")
</pallas_src>

<mosaic_0001>
module attributes {stable_mosaic.version = 11 : i64} {
  func.func @_hidden_kernel(%arg0: i32, %arg1: memref<32x256xf32, #tpu.memory_space<vmem>>, %arg2: memref<256x256xbf16, #tpu.memory_space<vmem>>, %arg3: memref<1x256xf32, #tpu.memory_space<vmem>>, %arg4: memref<32x256xf32, #tpu.memory_space<vmem>>) attributes {dimension_semantics = [#tpu.dimension_semantics<parallel>], iteration_bounds = array<i64: 1>, scalar_prefetch = 0 : i64, scratch_operands = 0 : i64, tpu.core_type = #tpu.core_type<tc>, window_params = [{transform_indices = @transform_0, window_bounds = array<i64: 32, 256>}, {pipeline_mode = #tpu.pipeline_mode<synchronous>, transform_indices = @transform_1, window_bounds = array<i64: 256, 256>}, {pipeline_mode = #tpu.pipeline_mode<synchronous>, transform_indices = @transform_2, window_bounds = array<i64: 1, 256>}, {transform_indices = @transform_3, window_bounds = array<i64: 32, 256>}]} {
    %c0 = arith.constant 0 : index
    %c0_0 = arith.constant 0 : index
    %0 = vector.load %arg1[%c0, %c0_0] : memref<32x256xf32, #tpu.memory_space<vmem>>, vector<32x256xf32>
    %1 = arith.truncf %0 : vector<32x256xf32> to vector<32x256xbf16>
    %c0_1 = arith.constant 0 : index
    %c0_2 = arith.constant 0 : index
    %2 = vector.load %arg2[%c0_1, %c0_2] : memref<256x256xbf16, #tpu.memory_space<vmem>>, vector<256x256xbf16>
    %cst = arith.constant dense<0.000000e+00> : vector<32x256xf32>
    %3 = tpu.matmul %1, %2, %cst {dimension_numbers = #tpu.dot_dimension_numbers<[1], [0], [0], [1], [0, 0, 1, 1], [], []>} : vector<32x256xbf16>, vector<256x256xbf16>, vector<32x256xf32> -> vector<32x256xf32>
    %c0_3 = arith.constant 0 : index
    %c0_4 = arith.constant 0 : index
    %4 = vector.load %arg3[%c0_3, %c0_4] : memref<1x256xf32, #tpu.memory_space<vmem>>, vector<1x256xf32>
    %5 = vector.broadcast %4 : vector<1x256xf32> to vector<32x256xf32>
    %6 = arith.addf %3, %5 : vector<32x256xf32>
    %7 = arith.mulf %6, %6 : vector<32x256xf32>
    %cst_5 = arith.constant dense<0.000000e+00> : vector<32xf32>
    %8 = vector.multi_reduction <add>, %7, %cst_5 [1] : vector<32x256xf32> to vector<32xf32>
    %9 = vector.shape_cast %8 : vector<32xf32> to vector<32x1xf32>
    %cst_6 = arith.constant 1.000000e-24 : f32
    %10 = vector.broadcast %cst_6 : f32 to vector<32x1xf32>
    %11 = arith.maximumf %9, %10 : vector<32x1xf32>
    %12 = math.rsqrt %11 : vector<32x1xf32>
    %cst_7 = arith.constant 5.000000e+01 : f32
    %13 = vector.broadcast %cst_7 : f32 to vector<32x1xf32>
    %14 = arith.mulf %13, %12 : vector<32x1xf32>
    %15 = vector.broadcast %14 : vector<32x1xf32> to vector<32x256xf32>
    %16 = arith.mulf %6, %15 : vector<32x256xf32>
    %c0_8 = arith.constant 0 : index
    %c0_9 = arith.constant 0 : index
    %17 = vector.load %arg4[%c0_8, %c0_9] : memref<32x256xf32, #tpu.memory_space<vmem>>, vector<32x256xf32>
    tpu.vector_store %arg4[%c0_8, %c0_9], %16 {strides = array<i32>} : memref<32x256xf32, #tpu.memory_space<vmem>>, vector<32x256xf32>,
    return
  }
  func.func @transform_0(%arg0: i32) -> (i32, i32) {
    %c0_i32 = arith.constant 0 : i32
    %c0_i32_0 = arith.constant 0 : i32
    return %arg0, %c0_i32 : i32, i32
  }
  func.func @transform_1(%arg0: i32) -> (i32, i32) {
    %c0_i32 = arith.constant 0 : i32
    %c0_i32_0 = arith.constant 0 : i32
    %c0_i32_1 = arith.constant 0 : i32
    return %c0_i32, %c0_i32_0 : i32, i32
  }
  func.func @transform_2(%arg0: i32) -> (i32, i32) {
    %c0_i32 = arith.constant 0 : i32
    %c0_i32_0 = arith.constant 0 : i32
    %c0_i32_1 = arith.constant 0 : i32
    return %c0_i32, %c0_i32_0 : i32, i32
  }
  func.func @transform_3(%arg0: i32) -> (i32, i32) {
    %c0_i32 = arith.constant 0 : i32
    %c0_i32_0 = arith.constant 0 : i32
    return %arg0, %c0_i32 : i32, i32
  }
}

</mosaic_0001>

<bundles_post_ra>
// kernel: tpu_custom_call.1
= control target key start
LH: loop header
LB: loop body
LE: loop exit
PB: predicated region body
PF: predicated region fallthrough
CT: control target
= control target key end

     0   :  { %8 = vsyncpa [#allocation3], 0  ;;  %s814_s0 = inlined_call_operand.hbm [shape: f32[32,256], index: 0, kind: input, shape index: {}]   ;;  %s815_s1 = inlined_call_operand.hbm [shape: bf16[256,256], index: 1, kind: input, shape index: {}]   ;;  %s816_s2 = inlined_call_operand.hbm [shape: f32[1,256], index: 2, kind: input, shape index: {}]   ;;  %s817_s3 = inlined_call_operand.hbm [shape: f32[32,256], index: 3, kind: output, shape index: {}]  }
   0x1   :  { %9 = vsyncpa [#allocation6], 0  ;;  %s28_s14 = sshll.u32 %s815_s1, 4  ;;  %s29_s14 = int_to_ptr.hbm [resolvable:$true] %s28_s14 }
   0x2   :  { %10 = vsyncpa [#allocation4], 0  ;;  %s728_s15 = smov [#allocation5]   ;;  %s15_s19 = sshll.u32 %s814_s0, 4  ;;  %s16_s19 = int_to_ptr.hbm [resolvable:$true] %s15_s19 }
   0x3   :  { %s30_s16 = sshll.u32 %s728_s15, 4  ;;  %s729_s20 = smov 128   ;;  %s31_s16 = int_to_ptr.vmem [resolvable:$true] %s30_s16 }
   0x4   :  { %s730_s21 = smov 8   ;;  %s731_s22 = smov [#allocation2]  }
   0x5   :  { %36 = dma.hbm_to_vmem [thread:$0]  %s29_s14, 4096, %s31_s16, [#allocation6], %s729_s20, %s729_s20, %s730_s21  }
   0x6   :  { %s17_s23 = sshll.u32 %s731_s22, 4  ;;  %s732_s24 = smov 256   ;;  %s18_s23 = int_to_ptr.vmem [resolvable:$true] %s17_s23 }
   0x7   :  { %s733_s25 = smov 16   ;;  %s42_s27 = sshll.u32 %s816_s2, 4  ;;  %s43_s27 = int_to_ptr.hbm [resolvable:$true] %s42_s27 }
   0x8   :  { %23 = dma.hbm_to_vmem [thread:$0]  %s16_s19, 1024, %s18_s23, [#allocation3], %s732_s24, %s732_s24, %s733_s25  }
   0x9   :  { %s734_s28 = smov [#allocation7]  }
   0xa   :  { %s44_s0 = sshll.u32 %s734_s28, 4  ;;  %s45_s0 = int_to_ptr.vmem [resolvable:$true] %s44_s0 }
   0xb   :  { %47 = dma.hbm_to_vmem [thread:$0]  %s43_s27, 32, %s45_s0, [#allocation6]  }
   0xc   :  { %722 = dma.done.wait [#allocation3], 1024  }
   0xd   :  { %723 = vsyncadd [#allocation3], 4294966272 }
   0xe   :  { %724 = dma.done.wait [#allocation6], 4128  }
   0xf   :  { %725 = vsyncadd [#allocation6], 4294963168  ;;  %v508_v0 = vld [vmem:[#allocation5 + $0x70] sm:$0xf]  ;;  %v593_v1 = vld [vmem:[#allocation5 + $0x74] sm:$0xf0] }
  0x10   :  { %v572_v2 = vld [vmem:[#allocation5 + $0xf0] sm:$0xf]  ;;  %v509_v3 = vor.u32 %v593_v1, %v508_v0  ;;  %v609_v4 = vld [vmem:[#allocation5 + $0xf4] sm:$0xf0]  ;;  %v592_v5 = vld [vmem:[#allocation5 + $0x74] sm:$0xf] }
  0x11   :  { %v510_v6 = vld [vmem:[#allocation5 + $0x78] sm:$0xf0]  ;;  %v573_v7 = vor.u32 %v609_v4, %v572_v2  ;;  %v608_v9 = vld [vmem:[#allocation5 + $0xf4] sm:$0xf]  ;;  %v500_v11 = vld [vmem:[#allocation5 + $0x60] sm:$0xf] }
  0x12   :  { %v513_v8 = vor.u32 %v592_v5, %v510_v6  ;;  %v574_v10 = vld [vmem:[#allocation5 + $0xf8] sm:$0xf0]  ;;  %270 = vmatpush.bf16.msra.mxu0 %v509_v3  ;;  %v591_v13 = vld [vmem:[#allocation5 + $0x64] sm:$0xf0]  ;;  %v564_v14 = vld [vmem:[#allocation5 + $0xe0] sm:$0xf] }
  0x13   :  { %v577_v12 = vor.u32 %v608_v9, %v574_v10  ;;  %v607_v15 = vld [vmem:[#allocation5 + $0xe4] sm:$0xf0]  ;;  %289 = vmatpush.bf16.msra.mxu1 %v573_v7  ;;  %v501_v16 = vor.u32 %v591_v13, %v500_v11  ;;  %v590_v18 = vld [vmem:[#allocation5 + $0x64] sm:$0xf]  ;;  %v502_v19 = vld [vmem:[#allocation5 + $0x68] sm:$0xf0] }
  0x14   :  { %308 = vmatpush.bf16.msra.mxu2 %v513_v8  ;;  %v565_v17 = vor.u32 %v607_v15, %v564_v14  ;;  %v606_v20 = vld [vmem:[#allocation5 + $0xe4] sm:$0xf]  ;;  %v505_v21 = vor.u32 %v590_v18, %v502_v19  ;;  %v566_v22 = vld [vmem:[#allocation5 + $0xe8] sm:$0xf0]  ;;  %v492_v23 = vld [vmem:[#allocation5 + $0x50] sm:$0xf] }
  0x15   :  { %327 = vmatpush.bf16.msra.mxu3 %v577_v12  ;;  %v589_v24 = vld [vmem:[#allocation5 + $0x54] sm:$0xf0]  ;;  %v569_v25 = vor.u32 %v606_v20, %v566_v22  ;;  %v556_v26 = vld [vmem:[#allocation5 + $0xd0] sm:$0xf]  ;;  %v588_v28 = vld [vmem:[#allocation5 + $0x54] sm:$0xf] }
  0x16   :  { %v605_v27 = vld [vmem:[#allocation5 + $0xd4] sm:$0xf0]  ;;  %271 = vmatpush.bf16.msra.mxu0 %v501_v16  ;;  %v493_v29 = vor.u32 %v589_v24, %v492_v23  ;;  %v494_v30 = vld [vmem:[#allocation5 + $0x58] sm:$0xf0]  ;;  %v604_v31 = vld [vmem:[#allocation5 + $0xd4] sm:$0xf] }
  0x17   :  { %v558_v32 = vld [vmem:[#allocation5 + $0xd8] sm:$0xf0]  ;;  %290 = vmatpush.bf16.msra.mxu1 %v565_v17  ;;  %v557_v33 = vor.u32 %v605_v27, %v556_v26  ;;  %v497_v34 = vor.u32 %v588_v28, %v494_v30  ;;  %v484_v35 = vld [vmem:[#allocation5 + $0x40] sm:$0xf]  ;;  %v587_v36 = vld [vmem:[#allocation5 + $0x44] sm:$0xf0] }
  0x18   :  { %309 = vmatpush.bf16.msra.mxu2 %v505_v21  ;;  %v548_v37 = vld [vmem:[#allocation5 + $0xc0] sm:$0xf]  ;;  %v561_v38 = vor.u32 %v604_v31, %v558_v32  ;;  %v603_v39 = vld [vmem:[#allocation5 + $0xc4] sm:$0xf0]  ;;  %v586_v40 = vld [vmem:[#allocation5 + $0x44] sm:$0xf]  ;;  %v485_v44 = vor.u32 %v587_v36, %v484_v35 }
  0x19   :  { %328 = vmatpush.bf16.msra.mxu3 %v569_v25  ;;  %v486_v41 = vld [vmem:[#allocation5 + $0x48] sm:$0xf0]  ;;  %v602_v42 = vld [vmem:[#allocation5 + $0xc4] sm:$0xf]  ;;  %v549_v45 = vor.u32 %v603_v39, %v548_v37  ;;  %v476_v47 = vld [vmem:[#allocation5 + $0x30] sm:$0xf] }
  0x1a   :  { %v550_v43 = vld [vmem:[#allocation5 + $0xc8] sm:$0xf0]  ;;  %272 = vmatpush.bf16.msra.mxu0 %v493_v29  ;;  %v489_v46 = vor.u32 %v586_v40, %v486_v41  ;;  %v585_v48 = vld [vmem:[#allocation5 + $0x34] sm:$0xf0]  ;;  %v540_v49 = vld [vmem:[#allocation5 + $0xb0] sm:$0xf] }
  0x1b   :  { %291 = vmatpush.bf16.msra.mxu1 %v557_v33  ;;  %v553_v50 = vor.u32 %v602_v42, %v550_v43  ;;  %v601_v51 = vld [vmem:[#allocation5 + $0xb4] sm:$0xf0]  ;;  %v584_v52 = vld [vmem:[#allocation5 + $0x34] sm:$0xf]  ;;  %v478_v53 = vld [vmem:[#allocation5 + $0x38] sm:$0xf0]  ;;  %v477_v56 = vor.u32 %v585_v48, %v476_v47 }
  0x1c   :  { %310 = vmatpush.bf16.msra.mxu2 %v497_v34  ;;  %v600_v54 = vld [vmem:[#allocation5 + $0xb4] sm:$0xf]  ;;  %v542_v55 = vld [vmem:[#allocation5 + $0xb8] sm:$0xf0]  ;;  %v541_v57 = vor.u32 %v601_v51, %v540_v49  ;;  %v481_v58 = vor.u32 %v584_v52, %v478_v53  ;;  %v468_v59 = vld [vmem:[#allocation5 + $0x20] sm:$0xf] }
  0x1d   :  { %329 = vmatpush.bf16.msra.mxu3 %v561_v38  ;;  %v583_v60 = vld [vmem:[#allocation5 + $0x24] sm:$0xf0]  ;;  %v532_v61 = vld [vmem:[#allocation5 + $0xa0] sm:$0xf]  ;;  %v545_v62 = vor.u32 %v600_v54, %v542_v55  ;;  %v582_v0 = vld [vmem:[#allocation5 + $0x24] sm:$0xf] }
  0x1e   :  { %273 = vmatpush.bf16.msra.mxu0 %v485_v44  ;;  %v599_v63 = vld [vmem:[#allocation5 + $0xa4] sm:$0xf0]  ;;  %v470_v1 = vld [vmem:[#allocation5 + $0x28] sm:$0xf0]  ;;  %v598_v2 = vld [vmem:[#allocation5 + $0xa4] sm:$0xf]  ;;  %v469_v4 = vor.u32 %v583_v60, %v468_v59 }
  0x1f   :  { %292 = vmatpush.bf16.msra.mxu1 %v549_v45  ;;  %v534_v3 = vld [vmem:[#allocation5 + $0xa8] sm:$0xf0]  ;;  %v533_v5 = vor.u32 %v599_v63, %v532_v61  ;;  %v473_v6 = vor.u32 %v582_v0, %v470_v1  ;;  %v460_v7 = vld [vmem:[#allocation5 + $0x10] sm:$0xf]  ;;  %v581_v8 = vld [vmem:[#allocation5 + $0x14] sm:$0xf0] }
  0x20   :  { %311 = vmatpush.bf16.msra.mxu2 %v489_v46  ;;  %v524_v9 = vld [vmem:[#allocation5 + $0x90] sm:$0xf]  ;;  %v537_v10 = vor.u32 %v598_v2, %v534_v3  ;;  %v597_v11 = vld [vmem:[#allocation5 + $0x94] sm:$0xf0]  ;;  %v580_v12 = vld [vmem:[#allocation5 + $0x14] sm:$0xf]  ;;  %v461_v16 = vor.u32 %v581_v8, %v460_v7 }
  0x21   :  { %330 = vmatpush.bf16.msra.mxu3 %v553_v50  ;;  %v462_v13 = vld [vmem:[#allocation5 + $0x18] sm:$0xf0]  ;;  %v596_v14 = vld [vmem:[#allocation5 + $0x94] sm:$0xf]  ;;  %v525_v17 = vor.u32 %v597_v11, %v524_v9  ;;  %v452_v19 = vld [vmem:[#allocation5] sm:$0xf] }
  0x22   :  { %274 = vmatpush.bf16.msra.mxu0 %v477_v56  ;;  %v526_v15 = vld [vmem:[#allocation5 + $0x98] sm:$0xf0]  ;;  %v465_v18 = vor.u32 %v580_v12, %v462_v13  ;;  %v579_v20 = vld [vmem:[#allocation5 + $0x4] sm:$0xf0]  ;;  %v516_v21 = vld [vmem:[#allocation5 + $0x80] sm:$0xf] }
  0x23   :  { %293 = vmatpush.bf16.msra.mxu1 %v541_v57  ;;  %v529_v22 = vor.u32 %v596_v14, %v526_v15  ;;  %v595_v23 = vld [vmem:[#allocation5 + $0x84] sm:$0xf0]  ;;  %v578_v24 = vld [vmem:[#allocation5 + $0x4] sm:$0xf]  ;;  %v454_v25 = vld [vmem:[#allocation5 + $0x8] sm:$0xf0]  ;;  %v453_v28 = vor.u32 %v579_v20, %v452_v19 }
  0x24   :  { %312 = vmatpush.bf16.msra.mxu2 %v481_v58  ;;  %v594_v26 = vld [vmem:[#allocation5 + $0x84] sm:$0xf]  ;;  %v518_v27 = vld [vmem:[#allocation5 + $0x88] sm:$0xf0]  ;;  %v62_v30 = vld [vmem:[#allocation2 + $0x10] sm:$0xff]  ;;  %v517_v31 = vor.u32 %v595_v23, %v516_v21  ;;  %v457_v32 = vor.u32 %v578_v24, %v454_v25  ;;  %s735_s2 = smov [#allocation8]  }
  0x25   :  { %331 = vmatpush.bf16.msra.mxu3 %v545_v62  ;;  %v60_v29 = vld [vmem:[#allocation2] sm:$0xff]  ;;  %v61_v33 = vld [vmem:[#allocation2 + $0x8] sm:$0xff]  ;;  %v63_v34 = vld [vmem:[#allocation2 + $0x18] sm:$0xff]  ;;  %v521_v35 = vor.u32 %v594_v26, %v518_v27  ;;  %s434_s29 = sshll.u32 %s735_s2, 4  ;;  %s436_s5 = sshll.u32 %s817_s3, 4  ;;  %s435_s29 = int_to_ptr.vmem [resolvable:$true] %s434_s29  ;;  %s437_s5 = int_to_ptr.hbm [resolvable:$true] %s436_s5 }
  0x26   :  { %275 = vmatpush.bf16.msra.mxu0 %v469_v4  ;;  %v68_v36 = vpack.c.bf16 %v62_v30, %v60_v29  ;;  %v69_v37 = vpack.c.bf16 %v63_v34, %v61_v33  ;;  %v64_v38 = vld [vmem:[#allocation2 + $0x20] sm:$0xff]  ;;  %v66_v39 = vld [vmem:[#allocation2 + $0x30] sm:$0xff]  ;;  %v65_v40 = vld [vmem:[#allocation2 + $0x28] sm:$0xff] }
  0x27   :  { %294 = vmatpush.bf16.msra.mxu1 %v533_v5  ;;  %v67_v41 = vld [vmem:[#allocation2 + $0x38] sm:$0xff]  ;;  %v70_v42 = vpack.c.bf16 %v66_v39, %v64_v38  ;;  %v104_v44 = vld [vmem:[#allocation7] sm:$0x3] }
  0x28   :  { %313 = vmatpush.bf16.msra.mxu2 %v473_v6  ;;  %v71_v43 = vpack.c.bf16 %v67_v41, %v65_v40  ;;  %v106_v45 = vperm.slane %v104_v44, 0  ;;  %v107_v49 = vperm.slane %v104_v44, 1 }
  0x29   :  { %332 = vmatpush.bf16.msra.mxu3 %v537_v10 }
  0x2a   :  { %276 = vmatpush.bf16.msra.mxu0 %v461_v16 }
  0x2b   :  { %295 = vmatpush.bf16.msra.mxu1 %v525_v17 }
  0x2c   :  { %314 = vmatpush.bf16.msra.mxu2 %v465_v18 }
  0x2d   :  { %333 = vmatpush.bf16.msra.mxu3 %v529_v22 }
  0x2e   :  { %277 = vmatpush.bf16.msra.mxu0 %v453_v28 }
  0x2f   :  { %296 = vmatpush.bf16.msra.mxu1 %v517_v31 }
  0x30   :  { %315 = vmatpush.bf16.msra.mxu2 %v457_v32 }
  0x31   :  { %334 = vmatpush.bf16.msra.mxu3 %v521_v35  ;;  %278 = vmatmul.bf16.vlgmr.msra.gmra.mxu0 %v68_v36 }
  0x32   :  { %297 = vmatmul.bf16.vlgmr.msra.gmra.mxu1 %v69_v37 }
  0x33   :  { %316 = vmatmul.bf16.vlgmr.msra.gmra.mxu2 %v68_v36 }
  0x34   :  { %335 = vmatmul.bf16.vlgmr.msra.gmra.mxu3 %v69_v37 }
  0x41   :  { %283 = vmatmul.bf16.gmra.mxu0 %v70_v42 }
  0x42   :  { %302 = vmatmul.bf16.gmra.mxu1 %v71_v43 }
  0x43   :  { %321 = vmatmul.bf16.gmra.mxu2 %v70_v42 }
  0x44   :  { %340 = vmatmul.bf16.gmra.mxu3 %v71_v43 }
  0xae   :  { %v279_v46 = vpop.f32.mrf.mxu0 }
  0xaf   :  { %v298_v47 = vpop.f32.mrf.mxu1  ;;  %v280_v48 = vadd.f32 %v279_v46, %v106_v45 }
  0xb1   :  { %v768_v50 = vadd.f32 %v298_v47, %v280_v48 }
  0xb3   :  { %v346_v56 = vmul.f32 %v768_v50, %v768_v50 }
  0xb6   :  { %v317_v51 = vpop.f32.mrf.mxu2  ;;  %v281_v54 = vpop.f32.mrf.mxu0 }
  0xb7   :  { %v318_v52 = vadd.f32 %v317_v51, %v107_v49  ;;  %v336_v53 = vpop.f32.mrf.mxu3  ;;  %v300_v57 = vpop.f32.mrf.mxu1  ;;  %v282_v58 = vadd.f32 %v281_v54, %v106_v45 }
  0xb9   :  { %v770_v55 = vadd.f32 %v336_v53, %v318_v52  ;;  %v776_v62 = vadd.f32 %v300_v57, %v282_v58 }
  0xbb   :  { %v347_v59 = vmul.f32 %v770_v55, %v770_v55  ;;  %v348_v4 = vmul.f32 %v776_v62, %v776_v62 }
  0xbd   :  { %v354_v60 = vadd.f32 %v347_v59, %v346_v56 }
  0xbe   :  { %v319_v61 = vpop.f32.mrf.mxu2  ;;  %v284_v1 = vpop.f32.mrf.mxu0 }
  0xbf   :  { %v320_v63 = vadd.f32 %v319_v61, %v107_v49  ;;  %v338_v0 = vpop.f32.mrf.mxu3  ;;  %355 = vadd.xlane.f32.xlu0 %v354_v60  ;;  %v285_v3 = vadd.f32 %v284_v1, %v106_v45  ;;  %v303_v6 = vpop.f32.mrf.mxu1 }
  0xc1   :  { %v778_v2 = vadd.f32 %v338_v0, %v320_v63  ;;  %v784_v7 = vadd.f32 %v303_v6, %v285_v3 }
  0xc3   :  { %v349_v5 = vmul.f32 %v778_v2, %v778_v2  ;;  %v350_v14 = vmul.f32 %v784_v7, %v784_v7 }
  0xc5   :  { %v357_v8 = vadd.f32 %v349_v5, %v348_v4 }
  0xc6   :  { %v322_v9 = vpop.f32.mrf.mxu2  ;;  %v286_v12 = vpop.f32.mrf.mxu0 }
  0xc7   :  { %v323_v10 = vadd.f32 %v322_v9, %v107_v49  ;;  %v341_v11 = vpop.f32.mrf.mxu3  ;;  %358 = vadd.xlane.f32.xlu0 %v357_v8  ;;  %v287_v15 = vadd.f32 %v286_v12, %v106_v45  ;;  %v305_v18 = vpop.f32.mrf.mxu1 }
  0xc9   :  { %v786_v13 = vadd.f32 %v341_v11, %v323_v10  ;;  %v792_v20 = vadd.f32 %v305_v18, %v287_v15 }
  0xcb   :  { %v351_v16 = vmul.f32 %v786_v13, %v786_v13  ;;  %v352_v24 = vmul.f32 %v792_v20, %v792_v20 }
  0xcd   :  { %v360_v17 = vadd.f32 %v351_v16, %v350_v14 }
  0xce   :  { %v324_v19 = vpop.f32.mrf.mxu2 }
  0xcf   :  { %v325_v21 = vadd.f32 %v324_v19, %v107_v49  ;;  %361 = vadd.xlane.f32.xlu1 %v360_v17  ;;  %v343_v22 = vpop.f32.mrf.mxu3 }
  0xd1   :  { %v794_v23 = vadd.f32 %v343_v22, %v325_v21 }
  0xd3   :  { %v353_v25 = vmul.f32 %v794_v23, %v794_v23 }
  0xd5   :  { %v363_v26 = vadd.f32 %v353_v25, %v352_v24 }
  0xd7   :  { %364 = vadd.xlane.f32.xlu1 %v363_v26 }
 0x132   :  { %v356_v27 = vpop.xlane.xlu0 %355 }
 0x133   :  { %v366_v28 = vmax.f32 %v356_v27, 1e-24 }
 0x135   :  { %618 = vrsqrt.f32 %v366_v28  ;;  %vm376_vm1 = vweird.f32 %v366_v28 }
 0x13a   :  { %v359_v29 = vpop.xlane.xlu0 %358 }
 0x13b   :  { %v619_v30 = vpop.eup %618  ;;  %v367_v31 = vmax.f32 %v359_v29, 1e-24 }
 0x13c   :  { %v371_v32 = vmul.f32 %v619_v30, %v366_v28  ;;  %vm377_vm0 = vweird.f32 %v619_v30 }
 0x13d   :  { %620 = vrsqrt.f32 %v367_v31  ;;  %vm378_vm2 = vmor %vm376_vm1, %vm377_vm0  ;;  %vm386_vm4 = vweird.f32 %v367_v31 }
 0x13e   :  { %v372_v33 = vmul.f32 %v619_v30, %v371_v32 }
 0x140   :  { %v373_v34 = vmul.f32 0.5, %v372_v33 }
 0x142   :  { %v374_v35 = vsub.f32 1.5, %v373_v34  ;;  %v362_v36 = vpop.xlane.xlu1 %361 }
 0x143   :  { %v621_v37 = vpop.eup %620  ;;  %v368_v38 = vmax.f32 %v362_v36, 1e-24 }
 0x144   :  { %v375_v39 = vmul.f32 %v619_v30, %v374_v35  ;;  %v381_v40 = vmul.f32 %v621_v37, %v367_v31  ;;  %vm387_vm3 = vweird.f32 %v621_v37 }
 0x145   :  { %622 = vrsqrt.f32 %v368_v38  ;;  %vm388_vm5 = vmor %vm386_vm4, %vm387_vm3  ;;  %vm396_vm7 = vweird.f32 %v368_v38 }
 0x146   :  { %v379_v41 = vsel %vm378_vm2, %v619_v30, %v375_v39  ;;  %v382_v42 = vmul.f32 %v621_v37, %v381_v40 }
 0x147   :  { %v410_v43 = vmul.f32 50.0, %v379_v41 }
 0x148   :  { %v383_v44 = vmul.f32 0.5, %v382_v42 }
 0x149   :  { %v414_v45 = vmul.f32 %v410_v43, %v768_v50  ;;  %v415_v46 = vmul.f32 %v410_v43, %v770_v55 }
 0x14a   :  { %v384_v47 = vsub.f32 1.5, %v383_v44  ;;  %v365_v48 = vpop.xlane.xlu1 %364 }
 0x14b   :  { %v623_v49 = vpop.eup %622  ;;  %422 = vst [vmem:[#allocation8] sm:$0xff] %v414_v45  ;;  %v369_v51 = vmax.f32 %v365_v48, 1e-24 }
 0x14c   :  { %423 = vst [vmem:[#allocation8 + $0x8] sm:$0xff] %v415_v46  ;;  %v385_v52 = vmul.f32 %v621_v37, %v384_v47  ;;  %v391_v53 = vmul.f32 %v623_v49, %v368_v38  ;;  %vm397_vm6 = vweird.f32 %v623_v49 }
 0x14d   :  { %624 = vrsqrt.f32 %v369_v51  ;;  %vm398_vm8 = vmor %vm396_vm7, %vm397_vm6  ;;  %vm406_vm10 = vweird.f32 %v369_v51 }
 0x14e   :  { %v389_v54 = vsel %vm388_vm5, %v621_v37, %v385_v52  ;;  %v392_v56 = vmul.f32 %v623_v49, %v391_v53 }
 0x14f   :  { %v411_v57 = vmul.f32 50.0, %v389_v54 }
 0x150   :  { %v393_v58 = vmul.f32 0.5, %v392_v56 }
 0x151   :  { %v416_v50 = vmul.f32 %v411_v57, %v776_v62  ;;  %v417_v55 = vmul.f32 %v411_v57, %v778_v2 }
 0x152   :  { %v394_v59 = vsub.f32 1.5, %v393_v58 }
 0x153   :  { %v625_v60 = vpop.eup %624  ;;  %424 = vst [vmem:[#allocation8 + $0x10] sm:$0xff] %v416_v50 }
 0x154   :  { %425 = vst [vmem:[#allocation8 + $0x18] sm:$0xff] %v417_v55  ;;  %v395_v61 = vmul.f32 %v623_v49, %v394_v59  ;;  %v401_v63 = vmul.f32 %v625_v60, %v369_v51  ;;  %vm407_vm9 = vweird.f32 %v625_v60 }
 0x155   :  { %vm408_vm11 = vmor %vm406_vm10, %vm407_vm9 }
 0x156   :  { %v399_v0 = vsel %vm398_vm8, %v623_v49, %v395_v61  ;;  %v402_v1 = vmul.f32 %v625_v60, %v401_v63 }
 0x157   :  { %v412_v3 = vmul.f32 50.0, %v399_v0 }
 0x158   :  { %v403_v4 = vmul.f32 0.5, %v402_v1 }
 0x159   :  { %v418_v5 = vmul.f32 %v412_v3, %v784_v7  ;;  %v419_v6 = vmul.f32 %v412_v3, %v786_v13 }
 0x15a   :  { %v404_v62 = vsub.f32 1.5, %v403_v4 }
 0x15b   :  { %426 = vst [vmem:[#allocation8 + $0x20] sm:$0xff] %v418_v5 }
 0x15c   :  { %427 = vst [vmem:[#allocation8 + $0x28] sm:$0xff] %v419_v6  ;;  %v405_v2 = vmul.f32 %v625_v60, %v404_v62 }
 0x15e   :  { %v409_v8 = vsel %vm408_vm11, %v625_v60, %v405_v2 }
 0x15f   :  { %v413_v9 = vmul.f32 50.0, %v409_v8 }
 0x161   :  { %v420_v10 = vmul.f32 %v413_v9, %v792_v20  ;;  %v421_v7 = vmul.f32 %v413_v9, %v794_v23 }
 0x163   :  { %428 = vst [vmem:[#allocation8 + $0x30] sm:$0xff] %v420_v10 }
 0x164   :  { %429 = vst [vmem:[#allocation8 + $0x38] sm:$0xff] %v421_v7 }
 0x165   :  { %442 = dma.vmem_to_hbm [thread:$0]  %s435_s29, 1024, %s437_s5, [#allocation4], %s732_s24, %s732_s24, %s733_s25  }
 0x166   :  { %726 = dma.done.wait [#allocation4], 1024  }
 0x167   :  { %727 = vsyncadd [#allocation4], 4294966272 }
 0x168   :  { %447 = vsyncpa [#allocation3], 1 }
 0x169   :  { %448 = vsyncpa [#allocation6], 1 }
 0x16a   :  { %449 = vsyncpa [#allocation4], 1 }

</bundles_post_ra>
